<compile_context>
chip_gen: v6e
topology: v6e:2x2x1
jax: 0.10.0
libtpu: 0.0.40
codegen_flags: <defaults>
</compile_context>

<pallas_src>
import jax
import jax.numpy as jnp
from jax.experimental import pallas as pl
from jax.experimental.pallas import tpu as pltpu


_TARGET_BLOCK_BYTES = 4 << 20      # per-block DMA target (single-pass path)
_MLP_TMP_BYTES = 2 << 20           # cap on the (BN, C, C_mid) fp32 intermediate
_SINGLE_PASS_BUDGET = 40 << 20     # VMEM budget gate for the fused path (v7x-safe)
_TILE_TARGET_BYTES = 4 << 20       # spatial tile target for the tiled fallback
_VMEM_CAP = 56 << 20               # never request more than this from Mosaic


def _largest_divisor_leq(n, cap):
    cap = max(1, min(n, cap))
    for d in range(cap, 0, -1):
        if n % d == 0:
            return d
    return 1


def _se_gate(x_avg, x_max, w1, b1, w2t, b2):
    """Shared 2-layer MLP gate on (B, C, 1) fp32 pooled stats.

    Weight layouts are pre-shaped so the whole MLP is broadcast-multiply +
    reductions (no lane-narrow MXU GEMMs, no relayouts):
      w1  : (1, C, C_mid)     b1 : (1, 1, C_mid)
      w2t : (1, C, C_mid)     b2 : (1, C, 1)
    """
    def gate(v):                                               # v: (B, C, 1)
        h = jnp.sum(v * w1, axis=1, keepdims=True) + b1        # (B, 1, C_mid)
        h = jnp.maximum(h, 0.0)
        o = jnp.sum(h * w2t, axis=2, keepdims=True) + b2       # (B, C, 1)
        return jax.nn.sigmoid(o)

    return gate(x_avg) * gate(x_max)                           # (B, C, 1)


def _senet_single_pass(x_flat, w1k, b1k, w2tk, b2k, hw, bn):
    """Fused path: one resident (BN, C, hw) block per grid step."""
    N, C, _ = x_flat.shape
    c_mid = w1k.shape[-1]
    itemsize = x_flat.dtype.itemsize
    inv_hw = 1.0 / float(hw)

    def kernel(x_ref, w1_ref, b1_ref, w2_ref, b2_ref, out_ref):
        x = x_ref[...]                                               # (BN, C, hw)
        # fp32 accumulation fused into the lane reduce; max exact in native dtype.
        x_avg = jnp.sum(x, axis=-1, keepdims=True,
                        dtype=jnp.float32) * inv_hw                  # (BN, C, 1)
        x_max = jnp.max(x, axis=-1, keepdims=True).astype(jnp.float32)
        se = _se_gate(x_avg, x_max, w1_ref[...], b1_ref[...],
                      w2_ref[...], b2_ref[...])                      # (BN, C, 1) f32
        # Single read-mul-store epilogue (sublane-broadcast gate, lane-dense store).
        out_ref[...] = x * se.astype(out_ref.dtype)

    wt_bytes = 4 * (w1k.size + b1k.size + w2tk.size + b2k.size)
    blk_bytes = bn * C * hw * itemsize
    vmem_limit = int(min(_VMEM_CAP,
                         max(16 << 20, 4 * blk_bytes + wt_bytes + (6 << 20))))

    return pl.pallas_call(
        kernel,
        out_shape=jax.ShapeDtypeStruct((N, C, hw), x_flat.dtype),
        grid=(N // bn,),
        in_specs=[
            pl.BlockSpec((bn, C, hw), lambda n: (n, 0, 0)),          # x
            pl.BlockSpec((1, C, c_mid), lambda n: (0, 0, 0)),        # w1 (resident)
            pl.BlockSpec((1, 1, c_mid), lambda n: (0, 0, 0)),        # b1 (resident)
            pl.BlockSpec((1, C, c_mid), lambda n: (0, 0, 0)),        # w2^T (resident)
            pl.BlockSpec((1, C, 1), lambda n: (0, 0, 0)),            # b2 (resident)
        ],
        out_specs=pl.BlockSpec((bn, C, hw), lambda n: (n, 0, 0)),
        compiler_params=pltpu.CompilerParams(
            dimension_semantics=("parallel",),
            vmem_limit_bytes=vmem_limit,
        ),
    )(x_flat, w1k, b1k, w2tk, b2k)


def _senet_tiled(x_flat, w1k, b1k, w2tk, b2k, hw, tile_target_bytes):
    """Two-pass spatially-tiled fallback for samples too large for the fused path."""
    N, C, _ = x_flat.shape
    c_mid = w1k.shape[-1]
    itemsize = x_flat.dtype.itemsize
    inv_hw = 1.0 / float(hw)

    # Spatial tile: multiple of 128 lanes, sized near the target bytes.
    t_hw = (max(tile_target_bytes, 1) // max(C * itemsize, 1)) // 128 * 128
    t_hw = max(t_hw, 128)
    if t_hw >= hw:
        # TODO(synk): channel-tiled variant for huge C with tiny H*W.
        t_hw = hw
    n_t = pl.cdiv(hw, t_hw)
    ragged = (hw % t_hw) != 0

    wt_bytes = 4 * (w1k.size + b1k.size + w2tk.size + b2k.size)
    tile_bytes = C * t_hw * itemsize
    vmem_limit = int(min(_VMEM_CAP,
                         max(16 << 20, 4 * tile_bytes + wt_bytes + (6 << 20))))

    # ---- pass 1: global sum / max pools, accumulated across spatial tiles ----
    def pool_kernel(x_ref, sum_ref, max_ref):
        t = pl.program_id(1)

        @pl.when(t == 0)
        def _():
            sum_ref[...] = jnp.zeros_like(sum_ref)
            max_ref[...] = jnp.full_like(max_ref, -jnp.inf)

        x = x_ref[...]                                              # (1, C, t_hw)
        if ragged:
            lane = jax.lax.broadcasted_iota(jnp.int32, x.shape, 2) + t * t_hw
            valid = lane < hw
            x_s = jnp.where(valid, x, jnp.array(0, x.dtype))
            x_m = jnp.where(valid, x, jnp.array(-jnp.inf, x.dtype))
        else:
            x_s = x
            x_m = x
        sum_ref[...] += jnp.sum(x_s, axis=-1, keepdims=True, dtype=jnp.float32)
        max_ref[...] = jnp.maximum(
            max_ref[...],
            jnp.max(x_m, axis=-1, keepdims=True).astype(jnp.float32))

    x_sum, x_max = pl.pallas_call(
        pool_kernel,
        out_shape=(jax.ShapeDtypeStruct((N, C, 1), jnp.float32),
                   jax.ShapeDtypeStruct((N, C, 1), jnp.float32)),
        grid=(N, n_t),
        in_specs=[pl.BlockSpec((1, C, t_hw), lambda n, t: (n, 0, t))],
        out_specs=(pl.BlockSpec((1, C, 1), lambda n, t: (n, 0, 0)),
                   pl.BlockSpec((1, C, 1), lambda n, t: (n, 0, 0))),
        compiler_params=pltpu.CompilerParams(
            dimension_semantics=("parallel", "arbitrary"),
            vmem_limit_bytes=vmem_limit,
        ),
    )(x_flat)

    # ---- pass 2: rescale; the tiny gate is recomputed per tile (cheap, hidden) ----
    def scale_kernel(x_ref, sum_ref, max_ref, w1_ref, b1_ref, w2_ref, b2_ref, o_ref):
        x_avg = sum_ref[...] * inv_hw                               # (1, C, 1) f32
        se = _se_gate(x_avg, max_ref[...], w1_ref[...], b1_ref[...],
                      w2_ref[...], b2_ref[...])                     # (1, C, 1) f32
        o_ref[...] = x_ref[...] * se.astype(o_ref.dtype)

    return pl.pallas_call(
        scale_kernel,
        out_shape=jax.ShapeDtypeStruct(x_flat.shape, x_flat.dtype),
        grid=(N, n_t),
        in_specs=[
            pl.BlockSpec((1, C, t_hw), lambda n, t: (n, 0, t)),     # x
            pl.BlockSpec((1, C, 1), lambda n, t: (n, 0, 0)),        # sum pool
            pl.BlockSpec((1, C, 1), lambda n, t: (n, 0, 0)),        # max pool
            pl.BlockSpec((1, C, c_mid), lambda n, t: (0, 0, 0)),    # w1
            pl.BlockSpec((1, 1, c_mid), lambda n, t: (0, 0, 0)),    # b1
            pl.BlockSpec((1, C, c_mid), lambda n, t: (0, 0, 0)),    # w2^T
            pl.BlockSpec((1, C, 1), lambda n, t: (0, 0, 0)),        # b2
        ],
        out_specs=pl.BlockSpec((1, C, t_hw), lambda n, t: (n, 0, t)),
        compiler_params=pltpu.CompilerParams(
            dimension_semantics=("parallel", "parallel"),
            vmem_limit_bytes=vmem_limit,
        ),
    )(x_flat, x_sum, x_max, w1k, b1k, w2tk, b2k)


def senet_v3(x, w1, b1, w2, b2, *,
             single_pass_budget_bytes=_SINGLE_PASS_BUDGET,
             tile_target_bytes=_TILE_TARGET_BYTES):
    """SE block forward.

    x : (N, C, H, W)
    w1: (C, C_mid), b1: (1, C_mid)   # fc1 as y = v @ w1 + b1
    w2: (C_mid, C), b2: (1, C)       # fc2 as y = h @ w2 + b2
    returns (N, C, H, W)
    """
    N, C, H, W = x.shape
    hw = H * W
    c_mid = w1.shape[1]
    itemsize = x.dtype.itemsize

    x_flat = x.reshape(N, C, hw)                  # free reshape, no HBM pass

    # Kernel-side weight layout: 3-D broadcast-friendly shapes so the tiny MLP
    # runs as VPU multiplies + reductions on (B, C, 1) pooled stats.
    w1k = w1.reshape(1, C, c_mid)
    b1k = b1.reshape(1, 1, c_mid)
    w2tk = w2.T.reshape(1, C, c_mid)
    b2k = b2.reshape(1, C, 1)

    wt_bytes = 4 * (w1k.size + b1k.size + w2tk.size + b2k.size)
    per_sample_bytes = C * hw * itemsize

    single_pass_ok = (4 * per_sample_bytes + wt_bytes + (6 << 20)
                      <= single_pass_budget_bytes)

    if single_pass_ok:
        # Batch-block: a few MiB per block, bounded by the VMEM budget, the MLP
        # intermediate size, and N//2 (keep >= 2 grid steps for v7x's 2 TCs).
        bn = min(
            N,
            max(1, _TARGET_BLOCK_BYTES // per_sample_bytes),
            max(1, _MLP_TMP_BYTES // max(C * c_mid * 4, 1)),
            max(1, (single_pass_budget_bytes - wt_bytes - (6 << 20))
                // max(4 * per_sample_bytes, 1)),
        )
        if N >= 2:
            bn = min(bn, N // 2)
        bn = _largest_divisor_leq(N, max(1, bn))
        out_flat = _senet_single_pass(x_flat, w1k, b1k, w2tk, b2k, hw, bn)
    else:
        out_flat = _senet_tiled(x_flat, w1k, b1k, w2tk, b2k, hw, tile_target_bytes)

    return out_flat.reshape(N, C, H, W)


def init_params(key, c_in, r):
    """Deterministic synthetic init matching nn.Linear shapes (stored (in, out))."""
    c_mid = c_in // r
    k1, k2, k3, k4 = jax.random.split(key, 4)
    w1 = jax.random.normal(k1, (c_in, c_mid), jnp.float32) * 0.1
    b1 = jax.random.normal(k2, (1, c_mid), jnp.float32) * 0.1
    w2 = jax.random.normal(k3, (c_mid, c_in), jnp.float32) * 0.1
    b2 = jax.random.normal(k4, (1, c_in), jnp.float32) * 0.1
    return w1, b1, w2, b2


def reference(x, w1, b1, w2, b2):
    """Pure-JAX reference mirroring the PyTorch forward (N>1, C>1 case)."""
    x_avg = jnp.mean(x, axis=(2, 3))
    x_max = jnp.max(x, axis=(2, 3))

    def mlp(v):
        h = jnp.maximum(v @ w1 + b1, 0.0)
        return jax.nn.sigmoid(h @ w2 + b2)

    se = mlp(x_avg) * mlp(x_max)
    return x * se[:, :, None, None]


if __name__ == "__main__":
    key = jax.random.PRNGKey(0)
    kx, kp, kx2 = jax.random.split(key, 3)

    N, C, r = 2, 4, 2
    w1, b1, w2, b2 = init_params(kp, C, r)

    # Test 1: fused single-pass path (batch-blocked grid).
    x = jax.random.normal(kx, (N, C, 16, 16), jnp.float32)
    out = jax.block_until_ready(senet_v3(x, w1, b1, w2, b2))
    ref = reference(x, w1, b1, w2, b2)
    assert out.shape == x.shape
    assert jnp.allclose(out, ref, atol=1e-5, rtol=1e-5), "single-pass mismatch"

    # Test 2: spatial size not a multiple of 128 (full-extent last dim, no padding).
    x2 = jax.random.normal(kx2, (N, C, 15, 15), jnp.float32)
    out2 = jax.block_until_ready(senet_v3(x2, w1, b1, w2, b2))
    ref2 = reference(x2, w1, b1, w2, b2)
    assert jnp.allclose(out2, ref2, atol=1e-5, rtol=1e-5), "non-128 hw mismatch"

    # Test 3: force the two-pass spatially-tiled fallback (v7x-style VMEM cap),
    # including a ragged (masked) last spatial tile: 225 = 128 + 97.
    out3 = jax.block_until_ready(
        senet_v3(x2, w1, b1, w2, b2,
                 single_pass_budget_bytes=1, tile_target_bytes=1))
    assert jnp.allclose(out3, ref2, atol=1e-5, rtol=1e-5), "tiled fallback mismatch"

    print("KERNEL_OK")
</pallas_src>

<mosaic_0001>
module attributes {stable_mosaic.version = 11 : i64} {
  func.func @kernel(%arg0: i32, %arg1: memref<1x4x256xf32, #tpu.memory_space<vmem>>, %arg2: memref<1x4x2xf32, #tpu.memory_space<vmem>>, %arg3: memref<1x1x2xf32, #tpu.memory_space<vmem>>, %arg4: memref<1x4x2xf32, #tpu.memory_space<vmem>>, %arg5: memref<1x4x1xf32, #tpu.memory_space<vmem>>, %arg6: memref<1x4x256xf32, #tpu.memory_space<vmem>>) attributes {dimension_semantics = [#tpu.dimension_semantics<parallel>], iteration_bounds = array<i64: 2>, scalar_prefetch = 0 : i64, scratch_operands = 0 : i64, tpu.core_type = #tpu.core_type<tc>, window_params = [{transform_indices = @transform_0, window_bounds = array<i64: 1, 4, 256>}, {pipeline_mode = #tpu.pipeline_mode<synchronous>, transform_indices = @transform_1, window_bounds = array<i64: 1, 4, 2>}, {pipeline_mode = #tpu.pipeline_mode<synchronous>, transform_indices = @transform_2, window_bounds = array<i64: 1, 1, 2>}, {pipeline_mode = #tpu.pipeline_mode<synchronous>, transform_indices = @transform_3, window_bounds = array<i64: 1, 4, 2>}, {pipeline_mode = #tpu.pipeline_mode<synchronous>, transform_indices = @transform_4, window_bounds = array<i64: 1, 4, 1>}, {transform_indices = @transform_5, window_bounds = array<i64: 1, 4, 256>}]} {
    %c0 = arith.constant 0 : index
    %c0_0 = arith.constant 0 : index
    %c0_1 = arith.constant 0 : index
    %0 = vector.load %arg1[%c0, %c0_0, %c0_1] : memref<1x4x256xf32, #tpu.memory_space<vmem>>, vector<1x4x256xf32>
    %cst = arith.constant dense<0.000000e+00> : vector<1x4xf32>
    %1 = vector.multi_reduction <add>, %0, %cst [2] : vector<1x4x256xf32> to vector<1x4xf32>
    %2 = vector.shape_cast %1 : vector<1x4xf32> to vector<1x4x1xf32>
    %cst_2 = arith.constant 3.906250e-03 : f32
    %3 = vector.broadcast %cst_2 : f32 to vector<1x4x1xf32>
    %4 = arith.mulf %2, %3 : vector<1x4x1xf32>
    %cst_3 = arith.constant dense<0xFF800000> : vector<1x4xf32>
    %5 = vector.multi_reduction <maximumf>, %0, %cst_3 [2] : vector<1x4x256xf32> to vector<1x4xf32>
    %6 = vector.shape_cast %5 : vector<1x4xf32> to vector<1x4x1xf32>
    %c0_4 = arith.constant 0 : index
    %c0_5 = arith.constant 0 : index
    %c0_6 = arith.constant 0 : index
    %7 = vector.load %arg2[%c0_4, %c0_5, %c0_6] : memref<1x4x2xf32, #tpu.memory_space<vmem>>, vector<1x4x2xf32>
    %c0_7 = arith.constant 0 : index
    %c0_8 = arith.constant 0 : index
    %c0_9 = arith.constant 0 : index
    %8 = vector.load %arg3[%c0_7, %c0_8, %c0_9] : memref<1x1x2xf32, #tpu.memory_space<vmem>>, vector<1x1x2xf32>
    %c0_10 = arith.constant 0 : index
    %c0_11 = arith.constant 0 : index
    %c0_12 = arith.constant 0 : index
    %9 = vector.load %arg4[%c0_10, %c0_11, %c0_12] : memref<1x4x2xf32, #tpu.memory_space<vmem>>, vector<1x4x2xf32>
    %c0_13 = arith.constant 0 : index
    %c0_14 = arith.constant 0 : index
    %c0_15 = arith.constant 0 : index
    %10 = vector.load %arg5[%c0_13, %c0_14, %c0_15] : memref<1x4x1xf32, #tpu.memory_space<vmem>>, vector<1x4x1xf32>
    %11 = vector.broadcast %4 : vector<1x4x1xf32> to vector<1x4x2xf32>
    %12 = arith.mulf %11, %7 : vector<1x4x2xf32>
    %cst_16 = arith.constant dense<0.000000e+00> : vector<1x2xf32>
    %13 = vector.multi_reduction <add>, %12, %cst_16 [1] : vector<1x4x2xf32> to vector<1x2xf32>
    %14 = vector.shape_cast %13 : vector<1x2xf32> to vector<1x1x2xf32>
    %15 = arith.addf %14, %8 : vector<1x1x2xf32>
    %cst_17 = arith.constant 0.000000e+00 : f32
    %16 = vector.broadcast %cst_17 : f32 to vector<1x1x2xf32>
    %17 = arith.maximumf %15, %16 : vector<1x1x2xf32>
    %18 = vector.broadcast %17 : vector<1x1x2xf32> to vector<1x4x2xf32>
    %19 = arith.mulf %18, %9 : vector<1x4x2xf32>
    %cst_18 = arith.constant dense<0.000000e+00> : vector<1x4xf32>
    %20 = vector.multi_reduction <add>, %19, %cst_18 [2] : vector<1x4x2xf32> to vector<1x4xf32>
    %21 = vector.shape_cast %20 : vector<1x4xf32> to vector<1x4x1xf32>
    %22 = arith.addf %21, %10 : vector<1x4x1xf32>
    %23 = arith.negf %22 : vector<1x4x1xf32>
    %24 = math.exp %23 : vector<1x4x1xf32>
    %cst_19 = arith.constant 1.000000e+00 : f32
    %25 = vector.broadcast %cst_19 : f32 to vector<1x4x1xf32>
    %26 = arith.addf %25, %24 : vector<1x4x1xf32>
    %27 = arith.divf %25, %26 : vector<1x4x1xf32>
    %28 = vector.broadcast %6 : vector<1x4x1xf32> to vector<1x4x2xf32>
    %29 = arith.mulf %28, %7 : vector<1x4x2xf32>
    %cst_20 = arith.constant dense<0.000000e+00> : vector<1x2xf32>
    %30 = vector.multi_reduction <add>, %29, %cst_20 [1] : vector<1x4x2xf32> to vector<1x2xf32>
    %31 = vector.shape_cast %30 : vector<1x2xf32> to vector<1x1x2xf32>
    %32 = arith.addf %31, %8 : vector<1x1x2xf32>
    %cst_21 = arith.constant 0.000000e+00 : f32
    %33 = vector.broadcast %cst_21 : f32 to vector<1x1x2xf32>
    %34 = arith.maximumf %32, %33 : vector<1x1x2xf32>
    %35 = vector.broadcast %34 : vector<1x1x2xf32> to vector<1x4x2xf32>
    %36 = arith.mulf %35, %9 : vector<1x4x2xf32>
    %cst_22 = arith.constant dense<0.000000e+00> : vector<1x4xf32>
    %37 = vector.multi_reduction <add>, %36, %cst_22 [2] : vector<1x4x2xf32> to vector<1x4xf32>
    %38 = vector.shape_cast %37 : vector<1x4xf32> to vector<1x4x1xf32>
    %39 = arith.addf %38, %10 : vector<1x4x1xf32>
    %40 = arith.negf %39 : vector<1x4x1xf32>
    %41 = math.exp %40 : vector<1x4x1xf32>
    %cst_23 = arith.constant 1.000000e+00 : f32
    %42 = vector.broadcast %cst_23 : f32 to vector<1x4x1xf32>
    %43 = arith.addf %42, %41 : vector<1x4x1xf32>
    %44 = arith.divf %42, %43 : vector<1x4x1xf32>
    %45 = arith.mulf %27, %44 : vector<1x4x1xf32>
    %46 = vector.broadcast %45 : vector<1x4x1xf32> to vector<1x4x256xf32>
    %47 = arith.mulf %0, %46 : vector<1x4x256xf32>
    %c0_24 = arith.constant 0 : index
    %c0_25 = arith.constant 0 : index
    %c0_26 = arith.constant 0 : index
    %48 = vector.load %arg6[%c0_24, %c0_25, %c0_26] : memref<1x4x256xf32, #tpu.memory_space<vmem>>, vector<1x4x256xf32>
    tpu.vector_store %arg6[%c0_24, %c0_25, %c0_26], %47 {strides = array<i32>} : memref<1x4x256xf32, #tpu.memory_space<vmem>>, vector<1x4x256xf32>,
    return
  }
  func.func @transform_0(%arg0: i32) -> (i32, i32, i32) {
    %c0_i32 = arith.constant 0 : i32
    %c0_i32_0 = arith.constant 0 : i32
    %c0_i32_1 = arith.constant 0 : i32
    return %arg0, %c0_i32, %c0_i32_0 : i32, i32, i32
  }
  func.func @transform_1(%arg0: i32) -> (i32, i32, i32) {
    %c0_i32 = arith.constant 0 : i32
    %c0_i32_0 = arith.constant 0 : i32
    %c0_i32_1 = arith.constant 0 : i32
    %c0_i32_2 = arith.constant 0 : i32
    return %c0_i32, %c0_i32_0, %c0_i32_1 : i32, i32, i32
  }
  func.func @transform_2(%arg0: i32) -> (i32, i32, i32) {
    %c0_i32 = arith.constant 0 : i32
    %c0_i32_0 = arith.constant 0 : i32
    %c0_i32_1 = arith.constant 0 : i32
    %c0_i32_2 = arith.constant 0 : i32
    return %c0_i32, %c0_i32_0, %c0_i32_1 : i32, i32, i32
  }
  func.func @transform_3(%arg0: i32) -> (i32, i32, i32) {
    %c0_i32 = arith.constant 0 : i32
    %c0_i32_0 = arith.constant 0 : i32
    %c0_i32_1 = arith.constant 0 : i32
    %c0_i32_2 = arith.constant 0 : i32
    return %c0_i32, %c0_i32_0, %c0_i32_1 : i32, i32, i32
  }
  func.func @transform_4(%arg0: i32) -> (i32, i32, i32) {
    %c0_i32 = arith.constant 0 : i32
    %c0_i32_0 = arith.constant 0 : i32
    %c0_i32_1 = arith.constant 0 : i32
    %c0_i32_2 = arith.constant 0 : i32
    return %c0_i32, %c0_i32_0, %c0_i32_1 : i32, i32, i32
  }
  func.func @transform_5(%arg0: i32) -> (i32, i32, i32) {
    %c0_i32 = arith.constant 0 : i32
    %c0_i32_0 = arith.constant 0 : i32
    %c0_i32_1 = arith.constant 0 : i32
    return %arg0, %c0_i32, %c0_i32_0 : i32, i32, i32
  }
}

</mosaic_0001>

<bundles_post_ra>
// kernel: tpu_custom_call.1
= control target key start
LH: loop header
LB: loop body
LE: loop exit
PB: predicated region body
PF: predicated region fallthrough
CT: control target
= control target key end

     0   :  { %10 = vsyncpa [#allocation3], 0  ;;  %s655_s0 = inlined_call_operand.vmem [shape: f32[2,4,256], index: 0, kind: input, shape index: {}]   ;;  %s656_s1 = inlined_call_operand.vmem [shape: f32[1,4,2], index: 1, kind: input, shape index: {}]   ;;  %s657_s2 = inlined_call_operand.vmem [shape: f32[1,1,2], index: 2, kind: input, shape index: {}]   ;;  %s658_s3 = inlined_call_operand.vmem [shape: f32[1,4,2], index: 3, kind: input, shape index: {}]   ;;  %s659_s4 = inlined_call_operand.vmem [shape: f32[1,4,1], index: 4, kind: input, shape index: {}]   ;;  %s660_s5 = inlined_call_operand.hbm [shape: f32[2,4,256], index: 5, kind: output, shape index: {}]  }
   0x1   :  { %12 = vsyncpa [#allocation3 + $0x1], 0  ;;  %s545_s18 = smov 0   ;;  %s547_s19 = smov 0  }
   0x2   :  { %s549_s20 = smov 0   ;;  %s551_s21 = smov 0  }
   0x3 LB: > { %s566_s22 = sadd.s32 4294967295, %s510_s21   ;;  %s383_s23 = sadd.s32 4294967294, %s510_s21   ;;  %s510_s21 = sphi %s551_s21, %s666_s21   ;;  %s506_s20 = sphi %s549_s20, %s665_s20   ;;  %s502_s19 = sphi %s547_s19, %s664_s19   ;;  %s498_s18 = sphi %s545_s18, %s663_s18  }
   0x4   : > { %s570_s24 = sadd.s32 1, %s510_s21   ;;  %s135_s25 = sadd.s32 1, %s506_s20 }
   0x5   : > { %s132_s26 = ssub.s32 %s510_s21, %s570_s24  ;;  %p145_p0 = scmp.ne.s32.totalorder %s506_s20, %s502_s19 }
   0x6   : > { %p133_p1 = scmp.eq.s32.totalorder %s132_s26, 0  ;;  %p146_p2 = scmp.eq.s32.totalorder %s566_s22, 1 }
   0x7   : > { %p151_p3 = scmp.ne.s32.totalorder %s502_s19, %s498_s18  ;;  %p152_p4 = scmp.eq.s32.totalorder %s383_s23, 1 }
   0x8   : > { %s581_s27 = scalar_select %p133_p1, %s506_s20, %s135_s25  }
   0x9   : > { %p583_p5 = por %p146_p2, %p145_p0  ;;  %p587_p6 = por %p152_p4, %p151_p3 }
   0xa   : > { %p386_p7 = scmp.ge.s32.totalorder %s510_s21, 1  ;;  %p190_p8 = scmp.lt.s32.totalorder %s510_s21, 3 }
   0xc   : > { %p191_p9 = pnand %p386_p7, %p190_p8 }
   0xd   : > { %p218_p10 = scmp.lt.s32.totalorder (!%p191_p9), %s566_s22, 1  ;;  %s215_s23 = sand.u32 (!%p191_p9), 1, %s502_s19  }
   0xe   : > { %194 = sbr.rel (%p191_p9) target bundleno = 512 (0x200), region = 40  ;;  %s387_s25 = sshll.u32 (!%p191_p9), %s215_s23, 3 }
   0xf   : > { %s398_s26 = sshll.u32 (!%p191_p9), %s566_s22, 7  ;;  %s310_s10 = scalar_lea.sflag (!%p191_p9), [#allocation3], %s215_s23 }
  0x10   : > { %s514_s12 = smov (!%p191_p9), [#allocation2]  }
  0x11   : > { %s454_s13 = sshll.u32 (!%p191_p9), %s514_s12, 4  ;;  %s455_s13 = int_to_ptr.vmem [resolvable:$false] %s454_s13 }
  0x13   : > { %s219_s30 = scalar_select %p218_p10, %s566_s22, 1  ;;  %vm227_vm0 = vcmask 1043456   ;;  %v239_v9 = vld [vmem:[%s656_s1] sm:$0xf]  ;;  %vm244_vm1 = vcmask 11264   ;;  %v254_v21 = vlaneseq  ;;  %v512_v43 = vmov 0  }
  0x14   : > { %v240_v27 = vld [vmem:[%s657_s2] sm:$0x1]  ;;  %440 = vset.pattern.permute.xlu0 %v512_v43  ;;  %v513_v58 = vmov 839922192   ;;  %s456_s22 = scalar_lea.vmem %s455_s13, 256 }
  0x15   : > { %s397_s6 = sshll.u32 %s219_s30, 3  ;;  %v255_v26 = vshrl.u32 %v254_v21, 7  ;;  %v241_v35 = vld [vmem:[%s658_s3] sm:$0xf]  ;;  %v300_v59 = vunpack.c.l.s4 %v513_v58  ;;  %s217_s30 = scalar_lea.vmem [#allocation2], %s387_s25 }
  0x16   : > { %s222_s9 = scalar_lea.vmem %s655_s0, %s397_s6  ;;  %v242_v44 = vld [vmem:[%s659_s4] sm:$0xf]  ;;  %s324_s6 = sshll.u32 %s217_s30, 4  ;;  %s325_s6 = int_to_ptr.vmem [resolvable:$true] %s324_s6 }
  0x17   : > { %v598_v0 = vld [vmem:[%s222_s9] sm:$0xff]  ;;  %v256_v32 = vsub.s32 0, %v255_v26  ;;  %v301_v60 = vunpack.c.0.s8 %v300_v59  ;;  %s322_s9 = scalar_lea.hbm %s660_s5, %s398_s26  ;;  %s450_s11 = scalar_lea.vmem %s325_s6, 128 }
  0x18   : > { %v225_v1 = vcombine.high %v598_v0, %v598_v0  ;;  %v228_v2 = vsel %vm227_vm0, %v598_v0, 0.0  ;;  %v234_v4 = vsel %vm227_vm0, %v598_v0, -inf  ;;  %p451_p11 = scmp.ne.s32.totalorder %s325_s6, %s450_s11  ;;  %p457_p0 = scmp.lt.s32.totalorder %s325_s6, %s455_s13 }
  0x19   : > { %v304_v61 = vsub.s32 %v301_v60, %v255_v26  ;;  %p458_p1 = scmp.lt.s32.totalorder %s456_s22, %s450_s11 }
  0x1a   : > { %v229_v3 = vsel %vm227_vm0, %v225_v1, 0.0  ;;  %v235_v5 = vsel %vm227_vm0, %v225_v1, -inf  ;;  %p452_p12 = pnand %p451_p11, %p583_p5 }
  0x1b   : > { %v230_v6 = vadd.f32 %v229_v3, %v228_v2  ;;  %v236_v7 = vmax.f32 %v234_v4, %v235_v5  ;;  %p459_p2 = por %p458_p1, %p457_p0 }
  0x1c   : > { %p453_p13 = pneg %p452_p12 }
  0x1d   : > { %231 = vadd.xlane.f32.xlu0 %v230_v6 }
  0x1e   : > { %p460_p3 = pnand %p459_p2, %p453_p13 }
  0x21   : > { %237 = vmax.xlane.f32.xlu0 %v236_v7 }
  0xa6   : > { %v232_v8 = vpop.xlane.xlu0 %231 }
  0xa7   : > { %v233_v10 = vmul.f32 0.00390625, %v232_v8 }
  0xa9   : > { %v243_v11 = vmul.f32 %v239_v9, %v233_v10 }
  0xaa   : > { %v238_v12 = vpop.xlane.xlu0 %237 }
  0xab   : > { %v245_v13 = vsel %vm244_vm1, %v243_v11, 0.0  ;;  %v269_v14 = vmul.f32 %v239_v9, %v238_v12 }
  0xac   : > { %v246_v15 = vrot.slane %v245_v13, 4 }
  0xad   : > { %v270_v16 = vsel %vm244_vm1, %v269_v14, 0.0 }
  0xae   : > { %v247_v17 = vadd.f32 %v246_v15, %v245_v13  ;;  %v271_v18 = vrot.slane %v270_v16, 4 }
  0xb0   : > { %v248_v19 = vrot.slane %v247_v17, 2  ;;  %v272_v20 = vadd.f32 %v271_v18, %v270_v16 }
  0xb2   : > { %v249_v22 = vadd.f32 %v248_v19, %v247_v17  ;;  %v273_v23 = vrot.slane %v272_v20, 2 }
  0xb4   : > { %v250_v24 = vrot.slane %v249_v22, 1  ;;  %v274_v25 = vadd.f32 %v273_v23, %v272_v20 }
  0xb6   : > { %v275_v28 = vrot.slane %v274_v25, 1  ;;  %v251_v29 = vadd.f32 %v250_v24, %v249_v22 }
  0xb8   : > { %v276_v30 = vadd.f32 %v275_v28, %v274_v25  ;;  %v252_v31 = vadd.f32 %v251_v29, %v240_v27 }
  0xba   : > { %v253_v33 = vmax.f32 %v252_v31, 0.0  ;;  %v277_v34 = vadd.f32 %v276_v30, %v240_v27 }
  0xbc   : > { %v257_v36 = vrot.slane %v253_v33, %v256_v32  ;;  %v278_v37 = vmax.f32 %v277_v34, 0.0 }
  0xbe   : > { %v258_v38 = vmul.f32 %v257_v36, %v241_v35  ;;  %v282_v39 = vrot.slane %v278_v37, %v256_v32 }
  0xc0   : > { %v259_v40 = vsel %vm244_vm1, %v258_v38, 0.0  ;;  %v283_v41 = vmul.f32 %v282_v39, %v241_v35 }
  0xc1   : > { %260 = vadd.xlane.f32.xlu1 %v259_v40 }
  0xc2   : > { %v284_v42 = vsel %vm244_vm1, %v283_v41, 0.0 }
  0xc5   : > { %285 = vadd.xlane.f32.xlu1 %v284_v42 }
 0x14a   : > { %v261_v45 = vpop.xlane.xlu1 %260 }
 0x14b   : > { %v262_v46 = vadd.f32 %v261_v45, %v242_v44 }
 0x14d   : > { %v390_v47 = vmul.f32 -1.442695, %v262_v46 }
 0x14e   : > { %v286_v48 = vpop.xlane.xlu1 %285 }
 0x14f   : > { %442 = vpow2.f32 %v390_v47  ;;  %v287_v49 = vadd.f32 %v286_v48, %v242_v44 }
 0x151   : > { %v391_v50 = vmul.f32 -1.442695, %v287_v49 }
 0x153   : > { %444 = vpow2.f32 %v391_v50 }
 0x15c   : > { %v443_v51 = vpop.eup %442 }
 0x15d   : > { %v266_v52 = vadd.f32 1.0, %v443_v51 }
 0x15f   : > { %446 = vrcp.f32 %v266_v52 }
 0x160   : > { %v445_v53 = vpop.eup %444 }
 0x161   : > { %v291_v54 = vadd.f32 1.0, %v445_v53 }
 0x163   : > { %448 = vrcp.f32 %v291_v54 }
 0x16c   : > { %v447_v55 = vpop.eup %446 }
 0x170   : > { %v449_v56 = vpop.eup %448 }
 0x171   : > { %v294_v57 = vmul.f32 %v449_v56, %v447_v55 }
 0x173   : > { %297 = vperm.xlu0 %440, %v294_v57  }
 0x1ee   : > { %v298_v62 = vpop.permute.xlu0 %297 }
 0x1ef   : > { %v305_v63 = vrot.slane %v298_v62, %v304_v61 }
 0x1f1   : > { %v307_v1 = vmul.f32 %v305_v63, %v598_v0 }
 0x1f3   : > { %308 = vst [vmem:[%s217_s30] sm:$0xff] %v307_v1 }
 0x1f4   : > { %463 = shalt.err (!%p460_p3)
}
 0x1f5   : > { %s464_s14 = scalar_lea.hbm %s322_s9, 128  ;;  %s468_s17 = scalar_lea.hbm %s660_s5, 256 }
 0x1f6   : > { %p465_p4 = scmp.ne.s32.totalorder %s322_s9, %s464_s14  ;;  %p469_p9 = scmp.lt.s32.totalorder %s322_s9, %s660_s5 }
 0x1f7   : > { %p470_p10 = scmp.lt.s32.totalorder %s468_s17, %s464_s14 }
 0x1f8   : > { %p466_p7 = pnand %p465_p4, %p583_p5 }
 0x1f9   : > { %p471_p11 = por %p470_p10, %p469_p9 }
 0x1fa   : > { %p467_p8 = pneg %p466_p7 }
 0x1fc   : > { %p472_p12 = pnand %p471_p11, %p467_p8 }
 0x1fe   : > { %475 = shalt.err (!%p472_p12)
}
 0x1ff   : > { %399 = dma.vmem_to_hbm [thread:$0]  (%p583_p5), %s325_s6, 128, %s322_s9, %s310_s10  }
 0x200 PF: > { %p405_p13 = scmp.ge.s32.totalorder %s510_s21, 2  ;;  %s336_s26 = sand.u32 1, %s498_s18  }
 0x201   : > { %s337_s30 = scalar_lea.sflag [#allocation3], %s336_s26 }
 0x202   : > { %p402_p0 = pnand %p405_p13, %p587_p6 }
 0x204   : > { %p403_p1 = pneg %p402_p0 }
 0x206   : > { %493 = dma.done.wait (%p403_p1), %s337_s30, 128  }
 0x207   : > { %495 = vsyncadd (%p403_p1), %s337_s30, 4294967168  ;;  %p15_p2 = scmp.ge.s32.totalorder %s570_s24, 4   ;;  %s663_s18 = smov %s502_s19 }
 0x208   : > { %s664_s19 = smov %s506_s20  ;;  %s665_s20 = smov %s581_s27 }
 0x209   : > { %s666_s21 = smov %s570_s24  ;;  %17 = sbr.rel (!%p15_p2) target bundleno = 3 (0x3), region = 75 }
 0x20e   :  { %342 = vsyncpa [#allocation3], 1 }
 0x20f   :  { %344 = vsyncpa [#allocation3 + $0x1], 1 }

</bundles_post_ra>
